<compile_context>
chip_gen: v7x
topology: tpu7x:2x2x1
jax: 0.10.0
libtpu: 0.0.40
codegen_flags: <defaults>
</compile_context>

<pallas_src>
import functools
import math

import jax
import jax.numpy as jnp
from jax.experimental import pallas as pl
from jax.experimental.pallas import tpu as pltpu


def _imputer_kernel(x_ref, m_ref,
                    w1_ref, b1_ref, w2_ref, b2_ref,
                    w3_ref, b3_ref, w4_ref, b4_ref,
                    o_ref):
    # x_ref / m_ref / o_ref: (tile_b, D) row-major blocks, straight from HBM.
    x = x_ref[...].astype(jnp.float32)
    m = m_ref[...].astype(jnp.float32)
    xm = x * m                                    # f32 -> observed entries exact

    mm_dtype = w1_ref.dtype                       # MXU operand dtype (bf16 / f32)

    def dense(a, w_ref, b_ref):
        # a: (tile_b, in) in mm_dtype; w: (in, out); b: (1, out) f32.
        # MXU matmul with f32 accumulation; bias-add in f32 on the VPU.
        return (jnp.dot(a, w_ref[...], preferred_element_type=jnp.float32)
                + b_ref[...])

    a = xm.astype(mm_dtype)
    a = jnp.maximum(dense(a, w1_ref, b1_ref), 0.0).astype(mm_dtype)   # (tb, 64)
    a = jnp.maximum(dense(a, w2_ref, b2_ref), 0.0).astype(mm_dtype)   # (tb, 128)
    a = jnp.maximum(dense(a, w3_ref, b3_ref), 0.0).astype(mm_dtype)   # (tb, 64)
    hidden = jax.nn.sigmoid(dense(a, w4_ref, b4_ref))                 # (tb, D) f32

    # input*m + (1-m)*hidden, all elementwise in f32; row-major store.
    o_ref[...] = (xm + (1.0 - m) * hidden).astype(o_ref.dtype)


def _round_up(x, n):
    return ((x + n - 1) // n) * n


@functools.partial(jax.jit, static_argnames=("tile_b", "matmul_dtype"))
def generator_imputer(x, m, params, *, tile_b=2048, matmul_dtype=jnp.bfloat16):
    """x, m: (B, D) float32.  params: PyTorch-layout w_i (out, in), b_i (out,)."""
    B, D = x.shape

    # Batch-tile policy:
    #   * big tile (default 2048) so per-step MXU work >> ~0.35 us step overhead;
    #   * >= 2 grid steps once B >= 1024 so the "parallel" axis shards across
    #     both v7x TensorCores (extra step is noise on 1-TC chips);
    #   * never (much) larger than the batch; ragged tail handled by the cdiv
    #     grid's masked last block (no whole-array padding pass).
    tb = int(tile_b)
    if B >= 1024:
        tb = min(tb, _round_up(pl.cdiv(B, 2), 128))
    tb = min(tb, _round_up(B, 8))
    tb = _round_up(max(tb, 8), 8)
    grid = (pl.cdiv(B, tb),)

    def layer(i):
        # Pre-transpose the (tiny) weights once so each layer is `a @ W`.
        w_t = params[f"w{i}"].T.astype(matmul_dtype)                 # (in, out)
        b = params[f"b{i}"].astype(jnp.float32).reshape(1, -1)       # (1, out)
        return w_t, b

    w1, b1 = layer(1)
    w2, b2 = layer(2)
    w3, b3 = layer(3)
    w4, b4 = layer(4)

    act_spec = pl.BlockSpec((tb, D), lambda i: (i, 0))
    full = lambda a: pl.BlockSpec(a.shape, lambda i: (0,) * a.ndim)

    return pl.pallas_call(
        _imputer_kernel,
        out_shape=jax.ShapeDtypeStruct((B, D), x.dtype),
        grid_spec=pltpu.PrefetchScalarGridSpec(
            num_scalar_prefetch=0,
            grid=grid,
            in_specs=[
                act_spec,                # x  (tb, D)
                act_spec,                # m  (tb, D)
                full(w1), full(b1),
                full(w2), full(b2),
                full(w3), full(b3),
                full(w4), full(b4),
            ],
            out_specs=act_spec,          # out (tb, D)
        ),
        compiler_params=pltpu.CompilerParams(
            dimension_semantics=("parallel",),
            vmem_limit_bytes=48 * 1024 * 1024),
    )(x, m, w1, b1, w2, b2, w3, b3, w4, b4)


def init_params(key, n_labels):
    """PyTorch nn.Linear defaults: uniform +/- 1/sqrt(fan_in); w is (out, in)."""
    dims = [(n_labels, 64), (64, 128), (128, 64), (64, n_labels)]  # (in, out)
    params = {}
    for idx, (fan_in, fan_out) in enumerate(dims, start=1):
        key, kw, kb = jax.random.split(key, 3)
        bound = 1.0 / math.sqrt(fan_in)
        params[f"w{idx}"] = jax.random.uniform(
            kw, (fan_out, fan_in), jnp.float32, -bound, bound)
        params[f"b{idx}"] = jax.random.uniform(
            kb, (fan_out,), jnp.float32, -bound, bound)
    return params


def reference_forward(x, m, params):
    xm = x * m
    h = jnp.maximum(xm @ params["w1"].T + params["b1"], 0.0)
    h = jnp.maximum(h @ params["w2"].T + params["b2"], 0.0)
    h = jnp.maximum(h @ params["w3"].T + params["b3"], 0.0)
    hidden = jax.nn.sigmoid(h @ params["w4"].T + params["b4"])
    return xm + (1.0 - m) * hidden


if __name__ == "__main__":
    n_labels = 16   # input_dim
    key = jax.random.PRNGKey(0)
    k_data, k_p = jax.random.split(key)
    params = init_params(k_p, n_labels)

    # batch=8: single exact tile.  batch=1200: 2 grid steps + ragged last
    # block (exercises the masked-tail path that replaced the jnp.pad).
    for batch in (8, 1200):
        kx, km = jax.random.split(jax.random.fold_in(k_data, batch))
        x = jax.random.normal(kx, (batch, n_labels), jnp.float32)
        m = (jax.random.uniform(km, (batch, n_labels)) > 0.5).astype(jnp.float32)

        ref = reference_forward(x, m, params)

        # Default (bf16 MXU operands, f32 accumulation) -> relaxed tolerance;
        # only imputed (m == 0) entries carry bf16 rounding, observed are exact.
        out = jax.block_until_ready(generator_imputer(x, m, params))
        assert out.shape == (batch, n_labels)
        assert jnp.allclose(out, ref, atol=5e-2, rtol=0.0), (
            f"bf16 mismatch vs reference (batch={batch})")

        # Full-f32 matmul path must match the reference tightly.
        out_f32 = jax.block_until_ready(
            generator_imputer(x, m, params, matmul_dtype=jnp.float32))
        assert jnp.allclose(out_f32, ref, atol=1e-5, rtol=1e-5), (
            f"f32 mismatch vs reference (batch={batch})")

    print("KERNEL_OK")
</pallas_src>

<mosaic_0001>
module attributes {stable_mosaic.version = 11 : i64} {
  func.func @_imputer_kernel(%arg0: i32, %arg1: memref<8x16xf32, #tpu.memory_space<vmem>>, %arg2: memref<8x16xf32, #tpu.memory_space<vmem>>, %arg3: memref<16x64xbf16, #tpu.memory_space<vmem>>, %arg4: memref<1x64xf32, #tpu.memory_space<vmem>>, %arg5: memref<64x128xbf16, #tpu.memory_space<vmem>>, %arg6: memref<1x128xf32, #tpu.memory_space<vmem>>, %arg7: memref<128x64xbf16, #tpu.memory_space<vmem>>, %arg8: memref<1x64xf32, #tpu.memory_space<vmem>>, %arg9: memref<64x16xbf16, #tpu.memory_space<vmem>>, %arg10: memref<1x16xf32, #tpu.memory_space<vmem>>, %arg11: memref<8x16xf32, #tpu.memory_space<vmem>>) attributes {dimension_semantics = [#tpu.dimension_semantics<parallel>], iteration_bounds = array<i64: 1>, scalar_prefetch = 0 : i64, scratch_operands = 0 : i64, tpu.core_type = #tpu.core_type<tc>, window_params = [{transform_indices = @transform_0, window_bounds = array<i64: 8, 16>}, {transform_indices = @transform_1, window_bounds = array<i64: 8, 16>}, {pipeline_mode = #tpu.pipeline_mode<synchronous>, transform_indices = @transform_2, window_bounds = array<i64: 16, 64>}, {pipeline_mode = #tpu.pipeline_mode<synchronous>, transform_indices = @transform_3, window_bounds = array<i64: 1, 64>}, {pipeline_mode = #tpu.pipeline_mode<synchronous>, transform_indices = @transform_4, window_bounds = array<i64: 64, 128>}, {pipeline_mode = #tpu.pipeline_mode<synchronous>, transform_indices = @transform_5, window_bounds = array<i64: 1, 128>}, {pipeline_mode = #tpu.pipeline_mode<synchronous>, transform_indices = @transform_6, window_bounds = array<i64: 128, 64>}, {pipeline_mode = #tpu.pipeline_mode<synchronous>, transform_indices = @transform_7, window_bounds = array<i64: 1, 64>}, {pipeline_mode = #tpu.pipeline_mode<synchronous>, transform_indices = @transform_8, window_bounds = array<i64: 64, 16>}, {pipeline_mode = #tpu.pipeline_mode<synchronous>, transform_indices = @transform_9, window_bounds = array<i64: 1, 16>}, {transform_indices = @transform_10, window_bounds = array<i64: 8, 16>}]} {
    %c0 = arith.constant 0 : index
    %c0_0 = arith.constant 0 : index
    %0 = vector.load %arg1[%c0, %c0_0] : memref<8x16xf32, #tpu.memory_space<vmem>>, vector<8x16xf32>
    %c0_1 = arith.constant 0 : index
    %c0_2 = arith.constant 0 : index
    %1 = vector.load %arg2[%c0_1, %c0_2] : memref<8x16xf32, #tpu.memory_space<vmem>>, vector<8x16xf32>
    %2 = arith.mulf %0, %1 : vector<8x16xf32>
    %3 = arith.truncf %2 : vector<8x16xf32> to vector<8x16xbf16>
    %c0_3 = arith.constant 0 : index
    %c0_4 = arith.constant 0 : index
    %4 = vector.load %arg3[%c0_3, %c0_4] : memref<16x64xbf16, #tpu.memory_space<vmem>>, vector<16x64xbf16>
    %cst = arith.constant dense<0.000000e+00> : vector<8x64xf32>
    %5 = tpu.matmul %3, %4, %cst {dimension_numbers = #tpu.dot_dimension_numbers<[1], [0], [0], [1], [0, 0, 1, 1], [], []>} : vector<8x16xbf16>, vector<16x64xbf16>, vector<8x64xf32> -> vector<8x64xf32>
    %c0_5 = arith.constant 0 : index
    %c0_6 = arith.constant 0 : index
    %6 = vector.load %arg4[%c0_5, %c0_6] : memref<1x64xf32, #tpu.memory_space<vmem>>, vector<1x64xf32>
    %7 = vector.broadcast %6 : vector<1x64xf32> to vector<8x64xf32>
    %8 = arith.addf %5, %7 : vector<8x64xf32>
    %cst_7 = arith.constant 0.000000e+00 : f32
    %9 = vector.broadcast %cst_7 : f32 to vector<8x64xf32>
    %10 = arith.maximumf %8, %9 : vector<8x64xf32>
    %11 = arith.truncf %10 : vector<8x64xf32> to vector<8x64xbf16>
    %c0_8 = arith.constant 0 : index
    %c0_9 = arith.constant 0 : index
    %12 = vector.load %arg5[%c0_8, %c0_9] : memref<64x128xbf16, #tpu.memory_space<vmem>>, vector<64x128xbf16>
    %cst_10 = arith.constant dense<0.000000e+00> : vector<8x128xf32>
    %13 = tpu.matmul %11, %12, %cst_10 {dimension_numbers = #tpu.dot_dimension_numbers<[1], [0], [0], [1], [0, 0, 1, 1], [], []>} : vector<8x64xbf16>, vector<64x128xbf16>, vector<8x128xf32> -> vector<8x128xf32>
    %c0_11 = arith.constant 0 : index
    %c0_12 = arith.constant 0 : index
    %14 = vector.load %arg6[%c0_11, %c0_12] : memref<1x128xf32, #tpu.memory_space<vmem>>, vector<1x128xf32>
    %15 = vector.broadcast %14 : vector<1x128xf32> to vector<8x128xf32>
    %16 = arith.addf %13, %15 : vector<8x128xf32>
    %cst_13 = arith.constant 0.000000e+00 : f32
    %17 = vector.broadcast %cst_13 : f32 to vector<8x128xf32>
    %18 = arith.maximumf %16, %17 : vector<8x128xf32>
    %19 = arith.truncf %18 : vector<8x128xf32> to vector<8x128xbf16>
    %c0_14 = arith.constant 0 : index
    %c0_15 = arith.constant 0 : index
    %20 = vector.load %arg7[%c0_14, %c0_15] : memref<128x64xbf16, #tpu.memory_space<vmem>>, vector<128x64xbf16>
    %cst_16 = arith.constant dense<0.000000e+00> : vector<8x64xf32>
    %21 = tpu.matmul %19, %20, %cst_16 {dimension_numbers = #tpu.dot_dimension_numbers<[1], [0], [0], [1], [0, 0, 1, 1], [], []>} : vector<8x128xbf16>, vector<128x64xbf16>, vector<8x64xf32> -> vector<8x64xf32>
    %c0_17 = arith.constant 0 : index
    %c0_18 = arith.constant 0 : index
    %22 = vector.load %arg8[%c0_17, %c0_18] : memref<1x64xf32, #tpu.memory_space<vmem>>, vector<1x64xf32>
    %23 = vector.broadcast %22 : vector<1x64xf32> to vector<8x64xf32>
    %24 = arith.addf %21, %23 : vector<8x64xf32>
    %cst_19 = arith.constant 0.000000e+00 : f32
    %25 = vector.broadcast %cst_19 : f32 to vector<8x64xf32>
    %26 = arith.maximumf %24, %25 : vector<8x64xf32>
    %27 = arith.truncf %26 : vector<8x64xf32> to vector<8x64xbf16>
    %c0_20 = arith.constant 0 : index
    %c0_21 = arith.constant 0 : index
    %28 = vector.load %arg9[%c0_20, %c0_21] : memref<64x16xbf16, #tpu.memory_space<vmem>>, vector<64x16xbf16>
    %cst_22 = arith.constant dense<0.000000e+00> : vector<8x16xf32>
    %29 = tpu.matmul %27, %28, %cst_22 {dimension_numbers = #tpu.dot_dimension_numbers<[1], [0], [0], [1], [0, 0, 1, 1], [], []>} : vector<8x64xbf16>, vector<64x16xbf16>, vector<8x16xf32> -> vector<8x16xf32>
    %c0_23 = arith.constant 0 : index
    %c0_24 = arith.constant 0 : index
    %30 = vector.load %arg10[%c0_23, %c0_24] : memref<1x16xf32, #tpu.memory_space<vmem>>, vector<1x16xf32>
    %31 = vector.broadcast %30 : vector<1x16xf32> to vector<8x16xf32>
    %32 = arith.addf %29, %31 : vector<8x16xf32>
    %33 = arith.negf %32 : vector<8x16xf32>
    %34 = math.exp %33 : vector<8x16xf32>
    %cst_25 = arith.constant 1.000000e+00 : f32
    %35 = vector.broadcast %cst_25 : f32 to vector<8x16xf32>
    %36 = arith.addf %35, %34 : vector<8x16xf32>
    %37 = arith.divf %35, %36 : vector<8x16xf32>
    %cst_26 = arith.constant 1.000000e+00 : f32
    %38 = vector.broadcast %cst_26 : f32 to vector<8x16xf32>
    %39 = arith.subf %38, %1 : vector<8x16xf32>
    %40 = arith.mulf %39, %37 : vector<8x16xf32>
    %41 = arith.addf %2, %40 : vector<8x16xf32>
    %c0_27 = arith.constant 0 : index
    %c0_28 = arith.constant 0 : index
    %42 = vector.load %arg11[%c0_27, %c0_28] : memref<8x16xf32, #tpu.memory_space<vmem>>, vector<8x16xf32>
    tpu.vector_store %arg11[%c0_27, %c0_28], %41 {strides = array<i32>} : memref<8x16xf32, #tpu.memory_space<vmem>>, vector<8x16xf32>,
    return
  }
  func.func @transform_0(%arg0: i32) -> (i32, i32) {
    %c0_i32 = arith.constant 0 : i32
    %c0_i32_0 = arith.constant 0 : i32
    return %arg0, %c0_i32 : i32, i32
  }
  func.func @transform_1(%arg0: i32) -> (i32, i32) {
    %c0_i32 = arith.constant 0 : i32
    %c0_i32_0 = arith.constant 0 : i32
    return %arg0, %c0_i32 : i32, i32
  }
  func.func @transform_2(%arg0: i32) -> (i32, i32) {
    %c0_i32 = arith.constant 0 : i32
    %c0_i32_0 = arith.constant 0 : i32
    %c0_i32_1 = arith.constant 0 : i32
    return %c0_i32, %c0_i32_0 : i32, i32
  }
  func.func @transform_3(%arg0: i32) -> (i32, i32) {
    %c0_i32 = arith.constant 0 : i32
    %c0_i32_0 = arith.constant 0 : i32
    %c0_i32_1 = arith.constant 0 : i32
    return %c0_i32, %c0_i32_0 : i32, i32
  }
  func.func @transform_4(%arg0: i32) -> (i32, i32) {
    %c0_i32 = arith.constant 0 : i32
    %c0_i32_0 = arith.constant 0 : i32
    %c0_i32_1 = arith.constant 0 : i32
    return %c0_i32, %c0_i32_0 : i32, i32
  }
  func.func @transform_5(%arg0: i32) -> (i32, i32) {
    %c0_i32 = arith.constant 0 : i32
    %c0_i32_0 = arith.constant 0 : i32
    %c0_i32_1 = arith.constant 0 : i32
    return %c0_i32, %c0_i32_0 : i32, i32
  }
  func.func @transform_6(%arg0: i32) -> (i32, i32) {
    %c0_i32 = arith.constant 0 : i32
    %c0_i32_0 = arith.constant 0 : i32
    %c0_i32_1 = arith.constant 0 : i32
    return %c0_i32, %c0_i32_0 : i32, i32
  }
  func.func @transform_7(%arg0: i32) -> (i32, i32) {
    %c0_i32 = arith.constant 0 : i32
    %c0_i32_0 = arith.constant 0 : i32
    %c0_i32_1 = arith.constant 0 : i32
    return %c0_i32, %c0_i32_0 : i32, i32
  }
  func.func @transform_8(%arg0: i32) -> (i32, i32) {
    %c0_i32 = arith.constant 0 : i32
    %c0_i32_0 = arith.constant 0 : i32
    %c0_i32_1 = arith.constant 0 : i32
    return %c0_i32, %c0_i32_0 : i32, i32
  }
  func.func @transform_9(%arg0: i32) -> (i32, i32) {
    %c0_i32 = arith.constant 0 : i32
    %c0_i32_0 = arith.constant 0 : i32
    %c0_i32_1 = arith.constant 0 : i32
    return %c0_i32, %c0_i32_0 : i32, i32
  }
  func.func @transform_10(%arg0: i32) -> (i32, i32) {
    %c0_i32 = arith.constant 0 : i32
    %c0_i32_0 = arith.constant 0 : i32
    return %arg0, %c0_i32 : i32, i32
  }
}

</mosaic_0001>

<bundles_post_ra>
// kernel: generator_imputer.1
= control target key start
LH: loop header
LB: loop body
LE: loop exit
PB: predicated region body
PF: predicated region fallthrough
CT: control target
= control target key end

     0   :  { %v550_v1 = vmov 0.0   ;;  %vm551_vm0 = vmmov 0   ;;  %vm56_vm1 = vcmask 130048   ;;  %s727_s0 = inlined_call_operand.vmem [shape: f32[8,16], index: 0, kind: input, shape index: {}]   ;;  %s728_s1 = inlined_call_operand.vmem [shape: f32[8,16], index: 1, kind: input, shape index: {}]   ;;  %s729_s2 = inlined_call_operand.vmem [shape: bf16[16,64], index: 2, kind: input, shape index: {}]   ;;  %s730_s3 = inlined_call_operand.vmem [shape: f32[1,64], index: 3, kind: input, shape index: {}]   ;;  %s731_s4 = inlined_call_operand.vmem [shape: bf16[64,128], index: 4, kind: input, shape index: {}]   ;;  %s732_s5 = inlined_call_operand.vmem [shape: f32[1,128], index: 5, kind: input, shape index: {}]   ;;  %s733_s6 = inlined_call_operand.vmem [shape: bf16[128,64], index: 6, kind: input, shape index: {}]   ;;  %s734_s7 = inlined_call_operand.vmem [shape: f32[1,64], index: 7, kind: input, shape index: {}]   ;;  %s735_s8 = inlined_call_operand.vmem [shape: bf16[64,16], index: 8, kind: input, shape index: {}]   ;;  %s736_s9 = inlined_call_operand.vmem [shape: f32[1,16], index: 9, kind: input, shape index: {}]   ;;  %s737_s10 = inlined_call_operand.hbm [shape: f32[8,16], index: 10, kind: output, shape index: {}]  }
   0x1   :  { %v505_v0 = vld [vmem:[%s729_s2] sm:$0xff]   ;;  %452 = vmatprep.subr.bf16.mxu0 %v550_v1  ;;  %458 = vmatprep.subr.bf16.mxu1 %v550_v1  ;;  %v507_v6 = vld [vmem:[%s731_s4 + $0x8] sm:$0xff]  }
   0x2   :  { %v37_v2 = vld [vmem:[%s727_s0] sm:$0xff]  ;;  %453 = vmatpush3.bf16.msra.mxu0 %v505_v0  ;;  %454 = vmatprep.mubr.msk.bf16.mxu0 %vm551_vm0, %v550_v1 }
   0x3   :  { %v618_v3 = vld [vmem:[%s728_s1] sm:$0xff]  ;;  %466 = vmatprep.mubr.msk.bf16.mxu1 %vm551_vm0, %v550_v1  ;;  %470 = vmatprep.subr.bf16.mxu0 %v550_v1 }
   0x4   :  { %v624_v4 = vmul.f32 %v618_v3, %v37_v2  ;;  %v506_v5 = vld [vmem:[%s731_s4] sm:$0xff]  }
   0x5   :  { %459 = vmatpush3.bf16.msra.mxu1 %v506_v5 }
   0x6   :  { %v40_v7 = vpack.c.bf16 %v624_v4, %v624_v4  ;;  %460 = vmatprep.subr.bf16.mxu1 %v550_v1 }
   0x8   :  { %455 = vmatmul.mubr.msk.bf16.vlgmr.msra.gmra.mrb[0].mxu0 %vm56_vm1, %v40_v7 }
   0x9   :  { %486 = vmatprep.mubr.msk.bf16.mxu0 %vm551_vm0, %v550_v1  ;;  %461 = vmatpush3.bf16.msra.mxu1 %v507_v6 }
   0xa   :  { %462 = vmatprep.subr.bf16.mxu1 %v550_v1 }
   0xb   :  { %15 = vsyncpa [#allocation3], 0  ;;  %v508_v8 = vld [vmem:[%s731_s4 + $0x10] sm:$0xff]   ;;  %v509_v9 = vld [vmem:[%s731_s4 + $0x18] sm:$0xff]   ;;  %vm141_vm2 = vcmask 523264   ;;  %v388_v55 = vsub.f32 1.0, %v618_v3 }
   0xc   :  { %v510_v10 = vld [vmem:[%s733_s6] sm:$0xff]   ;;  %v511_v11 = vld [vmem:[%s733_s6 + $0x8] sm:$0xff]   ;;  %v512_v12 = vld [vmem:[%s733_s6 + $0x10] sm:$0xff]  }
   0xd   :  { %463 = vmatpush3.bf16.msra.mxu1 %v508_v8  ;;  %471 = vmatpush3.bf16.msra.mxu0 %v510_v10  ;;  %v513_v13 = vld [vmem:[%s733_s6 + $0x18] sm:$0xff]   ;;  %v514_v14 = vld [vmem:[%s733_s6 + $0x20] sm:$0xff]   ;;  %v515_v15 = vld [vmem:[%s733_s6 + $0x28] sm:$0xff]  }
   0xe   :  { %464 = vmatprep.subr.bf16.mxu1 %v550_v1  ;;  %472 = vmatprep.subr.bf16.mxu0 %v550_v1  ;;  %v406_v16 = vld [vmem:[%s730_s3] ss:$0 sm:$0xff]  ;;  %v516_v24 = vld [vmem:[%s733_s6 + $0x30] sm:$0xff]   ;;  %v517_v25 = vld [vmem:[%s733_s6 + $0x38] sm:$0xff]  }
   0xf   :  { %v518_v26 = vld [vmem:[%s735_s8] sm:$0xff]   ;;  %v519_v27 = vld [vmem:[%s735_s8 + $0x8] sm:$0xff]   ;;  %v520_v36 = vld [vmem:[%s735_s8 + $0x10] sm:$0xff]  }
  0x10   :  { %v409_v28 = vld [vmem:[%s732_s5] ss:$0 sm:$0xff]  ;;  %v521_v37 = vld [vmem:[%s735_s8 + $0x18] sm:$0xff]  }
  0x11   :  { %465 = vmatpush3.bf16.msra.mxu1 %v509_v9  ;;  %473 = vmatpush3.bf16.msra.mxu0 %v511_v11  ;;  %v415_v38 = vld [vmem:[%s734_s7] ss:$0 sm:$0xff]  ;;  %s552_s7 = smov [#allocation2]  }
  0x12   :  { %490 = vmatprep.subr.bf16.mxu1 %v550_v1  ;;  %474 = vmatprep.subr.bf16.mxu0 %v550_v1  ;;  %v424_v46 = vld [vmem:[%s736_s9] ss:$0 sm:$0xff]  ;;  %s398_s8 = sshll.u32 %s552_s7, 4  ;;  %s399_s8 = int_to_ptr.vmem [resolvable:$true] %s398_s8 }
  0x13   :  { %s526_s9 = scalar_lea.vmem %s399_s8, 128  ;;  %p531_p1 = scmp.lt.s32.totalorder %s399_s8, %s399_s8 }
  0x14   :  { %p527_p0 = scmp.ne.s32.totalorder %s399_s8, %s526_s9  ;;  %p532_p2 = scmp.lt.s32.totalorder %s526_s9, %s526_s9 }
  0x15   :  { %475 = vmatpush3.bf16.msra.mxu0 %v512_v12 }
  0x16   :  { %476 = vmatprep.subr.bf16.mxu0 %v550_v1  ;;  %p533_p3 = por %p532_p2, %p531_p1 }
  0x18   :  { %p534_p4 = pnand %p533_p3, %p527_p0 }
  0x19   :  { %477 = vmatpush3.bf16.msra.mxu0 %v513_v13 }
  0x1a   :  { %478 = vmatprep.subr.bf16.mxu0 %v550_v1 }
  0x1d   :  { %479 = vmatpush3.bf16.msra.mxu0 %v514_v14 }
  0x1e   :  { %480 = vmatprep.subr.bf16.mxu0 %v550_v1 }
  0x21   :  { %481 = vmatpush3.bf16.msra.mxu0 %v515_v15 }
  0x22   :  { %482 = vmatprep.subr.bf16.mxu0 %v550_v1 }
  0x25   :  { %483 = vmatpush3.bf16.msra.mxu0 %v516_v24 }
  0x26   :  { %484 = vmatprep.subr.bf16.mxu0 %v550_v1 }
  0x29   :  { %485 = vmatpush3.bf16.msra.mxu0 %v517_v25 }
  0xdb   :  { %v94_v17 = vpop.f32.mrb[0].mxu0 }
  0xdc   :  { %v95_v18 = vadd.f32 %v406_v16, %v94_v17  ;;  %v456_v19 = vpop.f32.mrb[1].mxu0 }
  0xdd   :  { %v97_v20 = vpop.f32.mrb[2].mxu0 }
  0xde   :  { %v100_v21 = vmax.f32 %v95_v18, 0.0  ;;  %v457_v22 = vpop.f32.mrb[3].mxu0 }
  0xe0   :  { %v101_v23 = vpack.c.bf16 %v100_v21, %v100_v21 }
  0xe2   :  { %467 = vmatmul.mubr.msk.bf16.vlgmr.msra.gmra.mrb[0].mxu1 %vm141_vm2, %v101_v23 }
  0xe3   :  { %498 = vmatprep.mubr.msk.bf16.mxu1 %vm551_vm0, %v550_v1  ;;  %491 = vmatpush3.bf16.msra.mxu1 %v518_v26 }
  0xe4   :  { %492 = vmatprep.subr.bf16.mxu1 %v550_v1 }
  0xe7   :  { %493 = vmatpush3.bf16.msra.mxu1 %v519_v27 }
  0xe8   :  { %494 = vmatprep.subr.bf16.mxu1 %v550_v1 }
  0xeb   :  { %495 = vmatpush3.bf16.msra.mxu1 %v520_v36 }
  0xec   :  { %496 = vmatprep.subr.bf16.mxu1 %v550_v1 }
  0xef   :  { %497 = vmatpush3.bf16.msra.mxu1 %v521_v37 }
 0x1b5   :  { %v179_v29 = vpop.f32.mrb[0].mxu1 }
 0x1b6   :  { %v180_v30 = vadd.f32 %v409_v28, %v179_v29  ;;  %v468_v31 = vpop.f32.mrb[1].mxu1 }
 0x1b7   :  { %v182_v32 = vpop.f32.mrb[2].mxu1 }
 0x1b8   :  { %v185_v33 = vmax.f32 %v180_v30, 0.0  ;;  %v469_v34 = vpop.f32.mrb[3].mxu1 }
 0x1ba   :  { %v186_v35 = vpack.c.bf16 %v185_v33, %v185_v33 }
 0x1bc   :  { %487 = vmatmul.mubr.bf16.vlgmr.msra.gmra.mrb[4].mxu0 %v186_v35 }
 0x28f   :  { %v292_v39 = vpop.f32.mrb[4].mxu0 }
 0x290   :  { %v293_v40 = vadd.f32 %v415_v38, %v292_v39  ;;  %v488_v41 = vpop.f32.mrb[5].mxu0 }
 0x291   :  { %v295_v42 = vpop.f32.mrb[6].mxu0 }
 0x292   :  { %v298_v43 = vmax.f32 %v293_v40, 0.0  ;;  %v489_v44 = vpop.f32.mrb[7].mxu0 }
 0x294   :  { %v299_v45 = vpack.c.bf16 %v298_v43, %v298_v43 }
 0x296   :  { %499 = vmatmul.mubr.msk.bf16.vlgmr.msra.gmra.mrb[4].mxu1 %vm141_vm2, %v299_v45 }
 0x369   :  { %v376_v47 = vpop.f32.mrb[4].mxu1 }
 0x36a   :  { %v377_v48 = vadd.f32 %v424_v46, %v376_v47  ;;  %v500_v49 = vpop.f32.mrb[5].mxu1 }
 0x36b   :  { %v379_v50 = vpop.f32.mrb[6].mxu1 }
 0x36c   :  { %v430_v51 = vmul.f32 -1.442695, %v377_v48  ;;  %v501_v52 = vpop.f32.mrb[7].mxu1 }
 0x36e   :  { %522 = vpow2.f32 %v430_v51 }
 0x378   :  { %v523_v53 = vpop.eup %522 }
 0x379   :  { %v385_v54 = vadd.f32 1.0, %v523_v53 }
 0x37b   :  { %524 = vrcp.f32 %v385_v54 }
 0x385   :  { %v525_v56 = vpop.eup %524 }
 0x386   :  { %v389_v57 = vmul.f32 %v525_v56, %v388_v55 }
 0x388   :  { %v390_v58 = vadd.f32 %v389_v57, %v624_v4 }
 0x38a   :  { %391 = vst.msk [vmem:[#allocation2] sm:$0xff] %vm56_vm1, %v390_v58 }
 0x38b   :  { %537 = shalt.err (!%p534_p4)
}
 0x38c   :  { %s538_s30 = scalar_lea.hbm %s737_s10, 128 }
 0x38d   :  { %p539_p5 = scmp.ne.s32.totalorder %s737_s10, %s538_s30  ;;  %p542_p6 = scmp.lt.u32.totalorder %s538_s30, %s737_s10 }
 0x38f   :  { %p544_p7 = pnand %p542_p6, %p539_p5 }
 0x391   :  { %547 = shalt.err (!%p544_p7)
}
 0x392   :  { %401 = dma.vmem_to_hbm [thread:$0]  %s399_s8, 128, %s737_s10, [#allocation3]  }
 0x393   :  { %548 = dma.done.wait [#allocation3], 128  }
 0x394   :  { %549 = vsyncadd [#allocation3], 4294967168 }
 0x395   :  { %405 = vsyncpa [#allocation3], 1 }

</bundles_post_ra>
